<compile_context>
chip_gen: v6e
topology: v6e:2x2x1
jax: 0.10.0
libtpu: 0.0.40
codegen_flags: <defaults>
</compile_context>

<pallas_src>
import jax
import jax.numpy as jnp
from jax.experimental import pallas as pl
from jax.experimental.pallas import tpu as pltpu

HIDDEN = 256  # hidden width of each Q network (fixed by the PyTorch module)


def _critic_kernel(obs_ref, act_ref,
                   w1o_ref, w1a_ref,
                   w2a_ref, w2b_ref,
                   w3s_ref, bias_ref,
                   q_ref):
    """One batch tile of the twin-Q MLP, entirely in VMEM (all matmuls on MXU)."""
    f32 = jnp.float32
    H = HIDDEN

    # Packed bias buffer layout: [b1_q1 | b1_q2 | b2_q1 | b2_q2 | b3_q1 | b3_q2]
    b1 = bias_ref[:, 0:2 * H]              # (1, 512)  fused layer-1 bias
    b2a = bias_ref[:, 2 * H:3 * H]         # (1, 256)
    b2b = bias_ref[:, 3 * H:4 * H]         # (1, 256)
    b3 = bias_ref[:, 4 * H:4 * H + 2]      # (1, 2)

    # Fused layer 1 (both Q nets): obs/act split replaces the concat.
    h1 = jnp.dot(obs_ref[...], w1o_ref[...], preferred_element_type=f32)
    h1 = h1 + jnp.dot(act_ref[...], w1a_ref[...], preferred_element_type=f32)
    h1 = jnp.maximum(h1 + b1, 0.0)                         # (TB, 512)

    # Layer 2: independent per network; static lane-aligned slices (256 = 2*128).
    h1a = h1[:, :H]
    h1b = h1[:, H:]
    h2a = jnp.maximum(
        jnp.dot(h1a, w2a_ref[...], preferred_element_type=f32) + b2a, 0.0)
    h2b = jnp.maximum(
        jnp.dot(h1b, w2b_ref[...], preferred_element_type=f32) + b2b, 0.0)

    # Fused layer 3: block-diagonal (zero-padded) weights -> one (TB, 2) tile.
    q = jnp.dot(h2a, w3s_ref[0], preferred_element_type=f32)
    q = q + jnp.dot(h2b, w3s_ref[1], preferred_element_type=f32)
    q_ref[...] = q + b3


def _round_up(x, m):
    return ((x + m - 1) // m) * m


def pack_critic_params(params, obs_dim):
    """Pack raw per-network params (already (in,out)-transposed) for the kernel.

    Done once, outside the per-step forward, to keep per-call DMA count low.
    """
    H = HIDDEN
    w1 = jnp.concatenate([params["q1_w1"], params["q2_w1"]], axis=1)  # (in, 2H)
    w1o = w1[:obs_dim]                                                # (obs, 2H)
    w1a = w1[obs_dim:]                                                # (act, 2H)
    z = jnp.zeros((H, 1), jnp.float32)
    w3a = jnp.concatenate([params["q1_w3"], z], axis=1)               # (H, 2)
    w3b = jnp.concatenate([z, params["q2_w3"]], axis=1)               # (H, 2)
    w3s = jnp.stack([w3a, w3b], axis=0)                               # (2, H, 2)
    bias = jnp.concatenate([
        params["q1_b1"], params["q2_b1"],
        params["q1_b2"], params["q2_b2"],
        params["q1_b3"], params["q2_b3"],
    ], axis=1)                                                        # (1, 4H+2)
    return {
        "w1o": w1o, "w1a": w1a,
        "w2a": params["q1_w2"], "w2b": params["q2_w2"],
        "w3s": w3s, "bias": bias,
    }


def critic_forward(obs, act, packed, *, batch_tile=1024):
    """Returns (q1, q2), each (B, 1), matching Critic.forward(obs, act)."""
    obs = obs.astype(jnp.float32)
    act = act.astype(jnp.float32)
    B, obs_dim = obs.shape
    act_dim = act.shape[1]

    # Batch tile: multiple of the f32 sublane (8); pad B so the grid divides it.
    tb = batch_tile if B >= batch_tile else _round_up(max(B, 1), 8)
    B_pad = _round_up(B, tb)
    if B_pad != B:
        obs = jnp.pad(obs, ((0, B_pad - B), (0, 0)))
        act = jnp.pad(act, ((0, B_pad - B), (0, 0)))
    grid = (B_pad // tb,)

    def _resident(shape):
        # Constant index_map -> parameter block stays VMEM-resident across steps.
        nd = len(shape)
        return pl.BlockSpec(tuple(shape), lambda i, _nd=nd: (0,) * _nd)

    q = pl.pallas_call(
        _critic_kernel,
        out_shape=jax.ShapeDtypeStruct((B_pad, 2), jnp.float32),
        grid=grid,
        in_specs=[
            pl.BlockSpec((tb, obs_dim), lambda i: (i, 0)),
            pl.BlockSpec((tb, act_dim), lambda i: (i, 0)),
            _resident(packed["w1o"].shape),
            _resident(packed["w1a"].shape),
            _resident(packed["w2a"].shape),
            _resident(packed["w2b"].shape),
            _resident(packed["w3s"].shape),
            _resident(packed["bias"].shape),
        ],
        out_specs=pl.BlockSpec((tb, 2), lambda i: (i, 0)),
        compiler_params=pltpu.CompilerParams(
            dimension_semantics=("parallel",)),
    )(obs, act, packed["w1o"], packed["w1a"], packed["w2a"],
      packed["w2b"], packed["w3s"], packed["bias"])

    return q[:B, 0:1], q[:B, 1:2]


def init_critic_params(key, obs_dim, act_dim, hidden=HIDDEN):
    """Deterministic init mimicking torch.nn.Linear default U[-1/sqrt(fan_in), +].

    Weights stored transposed: (in_features, out_features); biases (1, out).
    """
    sizes = [obs_dim + act_dim, hidden, hidden, 1]
    params = {}
    for qname in ("q1", "q2"):
        for li, (fan_in, fan_out) in enumerate(zip(sizes[:-1], sizes[1:]), start=1):
            key, kw, kb = jax.random.split(key, 3)
            bound = 1.0 / (fan_in ** 0.5)
            params[f"{qname}_w{li}"] = jax.random.uniform(
                kw, (fan_in, fan_out), jnp.float32, minval=-bound, maxval=bound)
            params[f"{qname}_b{li}"] = jax.random.uniform(
                kb, (1, fan_out), jnp.float32, minval=-bound, maxval=bound)
    return params


def _reference_forward(obs, act, params):
    """Plain-JAX reference (mirrors the PyTorch forward) for correctness check."""
    x = jnp.concatenate([obs, act], axis=1).astype(jnp.float32)

    def mlp(p):
        h = jnp.maximum(x @ params[f"{p}_w1"] + params[f"{p}_b1"], 0.0)
        h = jnp.maximum(h @ params[f"{p}_w2"] + params[f"{p}_b2"], 0.0)
        return h @ params[f"{p}_w3"] + params[f"{p}_b3"]

    return mlp("q1"), mlp("q2")


if __name__ == "__main__":
    key = jax.random.PRNGKey(0)
    k_params, k_obs, k_act = jax.random.split(key, 3)

    batch, obs_dim, act_dim = 8, 16, 8
    params = init_critic_params(k_params, obs_dim, act_dim)
    packed = pack_critic_params(params, obs_dim)

    obs = jax.random.normal(k_obs, (batch, obs_dim), jnp.float32)
    act = jax.random.normal(k_act, (batch, act_dim), jnp.float32)

    q1, q2 = critic_forward(obs, act, packed)
    jax.block_until_ready((q1, q2))

    r1, r2 = _reference_forward(obs, act, params)
    assert q1.shape == (batch, 1) and q2.shape == (batch, 1)
    assert jnp.allclose(q1, r1, atol=1e-4, rtol=1e-4)
    assert jnp.allclose(q2, r2, atol=1e-4, rtol=1e-4)

    print("KERNEL_OK")
</pallas_src>

<mosaic_0001>
module attributes {stable_mosaic.version = 11 : i64} {
  func.func @_critic_kernel(%arg0: i32, %arg1: memref<8x16xf32, #tpu.memory_space<vmem>>, %arg2: memref<8x8xf32, #tpu.memory_space<vmem>>, %arg3: memref<16x512xf32, #tpu.memory_space<vmem>>, %arg4: memref<8x512xf32, #tpu.memory_space<vmem>>, %arg5: memref<256x256xf32, #tpu.memory_space<vmem>>, %arg6: memref<256x256xf32, #tpu.memory_space<vmem>>, %arg7: memref<2x256x2xf32, #tpu.memory_space<vmem>>, %arg8: memref<1x1026xf32, #tpu.memory_space<vmem>>, %arg9: memref<8x2xf32, #tpu.memory_space<vmem>>) attributes {dimension_semantics = [#tpu.dimension_semantics<parallel>], iteration_bounds = array<i64: 1>, scalar_prefetch = 0 : i64, scratch_operands = 0 : i64, tpu.core_type = #tpu.core_type<tc>, window_params = [{transform_indices = @transform_0, window_bounds = array<i64: 8, 16>}, {transform_indices = @transform_1, window_bounds = array<i64: 8, 8>}, {pipeline_mode = #tpu.pipeline_mode<synchronous>, transform_indices = @transform_2, window_bounds = array<i64: 16, 512>}, {pipeline_mode = #tpu.pipeline_mode<synchronous>, transform_indices = @transform_3, window_bounds = array<i64: 8, 512>}, {pipeline_mode = #tpu.pipeline_mode<synchronous>, transform_indices = @transform_4, window_bounds = array<i64: 256, 256>}, {pipeline_mode = #tpu.pipeline_mode<synchronous>, transform_indices = @transform_5, window_bounds = array<i64: 256, 256>}, {pipeline_mode = #tpu.pipeline_mode<synchronous>, transform_indices = @transform_6, window_bounds = array<i64: 2, 256, 2>}, {pipeline_mode = #tpu.pipeline_mode<synchronous>, transform_indices = @transform_7, window_bounds = array<i64: 1, 1026>}, {transform_indices = @transform_8, window_bounds = array<i64: 8, 2>}]} {
    %c0 = arith.constant 0 : index
    %c0_0 = arith.constant 0 : index
    %0 = vector.load %arg8[%c0, %c0_0] : memref<1x1026xf32, #tpu.memory_space<vmem>>, vector<1x512xf32>
    %c0_1 = arith.constant 0 : index
    %c512 = arith.constant 512 : index
    %1 = vector.load %arg8[%c0_1, %c512] : memref<1x1026xf32, #tpu.memory_space<vmem>>, vector<1x256xf32>
    %c0_2 = arith.constant 0 : index
    %c768 = arith.constant 768 : index
    %2 = vector.load %arg8[%c0_2, %c768] : memref<1x1026xf32, #tpu.memory_space<vmem>>, vector<1x256xf32>
    %c0_3 = arith.constant 0 : index
    %c1024 = arith.constant 1024 : index
    %3 = vector.load %arg8[%c0_3, %c1024] : memref<1x1026xf32, #tpu.memory_space<vmem>>, vector<1x2xf32>
    %c0_4 = arith.constant 0 : index
    %c0_5 = arith.constant 0 : index
    %4 = vector.load %arg1[%c0_4, %c0_5] : memref<8x16xf32, #tpu.memory_space<vmem>>, vector<8x16xf32>
    %c0_6 = arith.constant 0 : index
    %c0_7 = arith.constant 0 : index
    %5 = vector.load %arg3[%c0_6, %c0_7] : memref<16x512xf32, #tpu.memory_space<vmem>>, vector<16x512xf32>
    %cst = arith.constant dense<0.000000e+00> : vector<8x512xf32>
    %6 = tpu.matmul %4, %5, %cst {dimension_numbers = #tpu.dot_dimension_numbers<[1], [0], [0], [1], [0, 0, 1, 1], [], []>} : vector<8x16xf32>, vector<16x512xf32>, vector<8x512xf32> -> vector<8x512xf32>
    %c0_8 = arith.constant 0 : index
    %c0_9 = arith.constant 0 : index
    %7 = vector.load %arg2[%c0_8, %c0_9] : memref<8x8xf32, #tpu.memory_space<vmem>>, vector<8x8xf32>
    %c0_10 = arith.constant 0 : index
    %c0_11 = arith.constant 0 : index
    %8 = vector.load %arg4[%c0_10, %c0_11] : memref<8x512xf32, #tpu.memory_space<vmem>>, vector<8x512xf32>
    %cst_12 = arith.constant dense<0.000000e+00> : vector<8x512xf32>
    %9 = tpu.matmul %7, %8, %cst_12 {dimension_numbers = #tpu.dot_dimension_numbers<[1], [0], [0], [1], [0, 0, 1, 1], [], []>} : vector<8x8xf32>, vector<8x512xf32>, vector<8x512xf32> -> vector<8x512xf32>
    %10 = arith.addf %6, %9 : vector<8x512xf32>
    %11 = vector.broadcast %0 : vector<1x512xf32> to vector<8x512xf32>
    %12 = arith.addf %10, %11 : vector<8x512xf32>
    %cst_13 = arith.constant 0.000000e+00 : f32
    %13 = vector.broadcast %cst_13 : f32 to vector<8x512xf32>
    %14 = arith.maximumf %12, %13 : vector<8x512xf32>
    %15 = vector.extract_strided_slice %14 {offsets = [0, 0], sizes = [8, 256], strides = [1, 1]} : vector<8x512xf32> to vector<8x256xf32>
    %16 = vector.extract_strided_slice %14 {offsets = [0, 256], sizes = [8, 256], strides = [1, 1]} : vector<8x512xf32> to vector<8x256xf32>
    %c0_14 = arith.constant 0 : index
    %c0_15 = arith.constant 0 : index
    %17 = vector.load %arg5[%c0_14, %c0_15] : memref<256x256xf32, #tpu.memory_space<vmem>>, vector<256x256xf32>
    %cst_16 = arith.constant dense<0.000000e+00> : vector<8x256xf32>
    %18 = tpu.matmul %15, %17, %cst_16 {dimension_numbers = #tpu.dot_dimension_numbers<[1], [0], [0], [1], [0, 0, 1, 1], [], []>} : vector<8x256xf32>, vector<256x256xf32>, vector<8x256xf32> -> vector<8x256xf32>
    %19 = vector.broadcast %1 : vector<1x256xf32> to vector<8x256xf32>
    %20 = arith.addf %18, %19 : vector<8x256xf32>
    %cst_17 = arith.constant 0.000000e+00 : f32
    %21 = vector.broadcast %cst_17 : f32 to vector<8x256xf32>
    %22 = arith.maximumf %20, %21 : vector<8x256xf32>
    %c0_18 = arith.constant 0 : index
    %c0_19 = arith.constant 0 : index
    %23 = vector.load %arg6[%c0_18, %c0_19] : memref<256x256xf32, #tpu.memory_space<vmem>>, vector<256x256xf32>
    %cst_20 = arith.constant dense<0.000000e+00> : vector<8x256xf32>
    %24 = tpu.matmul %16, %23, %cst_20 {dimension_numbers = #tpu.dot_dimension_numbers<[1], [0], [0], [1], [0, 0, 1, 1], [], []>} : vector<8x256xf32>, vector<256x256xf32>, vector<8x256xf32> -> vector<8x256xf32>
    %25 = vector.broadcast %2 : vector<1x256xf32> to vector<8x256xf32>
    %26 = arith.addf %24, %25 : vector<8x256xf32>
    %cst_21 = arith.constant 0.000000e+00 : f32
    %27 = vector.broadcast %cst_21 : f32 to vector<8x256xf32>
    %28 = arith.maximumf %26, %27 : vector<8x256xf32>
    %c0_22 = arith.constant 0 : index
    %c0_23 = arith.constant 0 : index
    %c0_24 = arith.constant 0 : index
    %29 = vector.load %arg7[%c0_22, %c0_23, %c0_24] : memref<2x256x2xf32, #tpu.memory_space<vmem>>, vector<1x256x2xf32>
    %30 = vector.shape_cast %29 : vector<1x256x2xf32> to vector<256x2xf32>
    %cst_25 = arith.constant dense<0.000000e+00> : vector<8x2xf32>
    %31 = tpu.matmul %22, %30, %cst_25 {dimension_numbers = #tpu.dot_dimension_numbers<[1], [0], [0], [1], [0, 0, 1, 1], [], []>} : vector<8x256xf32>, vector<256x2xf32>, vector<8x2xf32> -> vector<8x2xf32>
    %c1 = arith.constant 1 : index
    %c0_26 = arith.constant 0 : index
    %c0_27 = arith.constant 0 : index
    %32 = vector.load %arg7[%c1, %c0_26, %c0_27] : memref<2x256x2xf32, #tpu.memory_space<vmem>>, vector<1x256x2xf32>
    %33 = vector.shape_cast %32 : vector<1x256x2xf32> to vector<256x2xf32>
    %cst_28 = arith.constant dense<0.000000e+00> : vector<8x2xf32>
    %34 = tpu.matmul %28, %33, %cst_28 {dimension_numbers = #tpu.dot_dimension_numbers<[1], [0], [0], [1], [0, 0, 1, 1], [], []>} : vector<8x256xf32>, vector<256x2xf32>, vector<8x2xf32> -> vector<8x2xf32>
    %35 = arith.addf %31, %34 : vector<8x2xf32>
    %36 = vector.broadcast %3 : vector<1x2xf32> to vector<8x2xf32>
    %37 = arith.addf %35, %36 : vector<8x2xf32>
    %c0_29 = arith.constant 0 : index
    %c0_30 = arith.constant 0 : index
    %38 = vector.load %arg9[%c0_29, %c0_30] : memref<8x2xf32, #tpu.memory_space<vmem>>, vector<8x2xf32>
    tpu.vector_store %arg9[%c0_29, %c0_30], %37 {strides = array<i32>} : memref<8x2xf32, #tpu.memory_space<vmem>>, vector<8x2xf32>,
    return
  }
  func.func @transform_0(%arg0: i32) -> (i32, i32) {
    %c0_i32 = arith.constant 0 : i32
    %c0_i32_0 = arith.constant 0 : i32
    return %arg0, %c0_i32 : i32, i32
  }
  func.func @transform_1(%arg0: i32) -> (i32, i32) {
    %c0_i32 = arith.constant 0 : i32
    %c0_i32_0 = arith.constant 0 : i32
    return %arg0, %c0_i32 : i32, i32
  }
  func.func @transform_2(%arg0: i32) -> (i32, i32) {
    %c0_i32 = arith.constant 0 : i32
    %c0_i32_0 = arith.constant 0 : i32
    %c0_i32_1 = arith.constant 0 : i32
    return %c0_i32, %c0_i32_0 : i32, i32
  }
  func.func @transform_3(%arg0: i32) -> (i32, i32) {
    %c0_i32 = arith.constant 0 : i32
    %c0_i32_0 = arith.constant 0 : i32
    %c0_i32_1 = arith.constant 0 : i32
    return %c0_i32, %c0_i32_0 : i32, i32
  }
  func.func @transform_4(%arg0: i32) -> (i32, i32) {
    %c0_i32 = arith.constant 0 : i32
    %c0_i32_0 = arith.constant 0 : i32
    %c0_i32_1 = arith.constant 0 : i32
    return %c0_i32, %c0_i32_0 : i32, i32
  }
  func.func @transform_5(%arg0: i32) -> (i32, i32) {
    %c0_i32 = arith.constant 0 : i32
    %c0_i32_0 = arith.constant 0 : i32
    %c0_i32_1 = arith.constant 0 : i32
    return %c0_i32, %c0_i32_0 : i32, i32
  }
  func.func @transform_6(%arg0: i32) -> (i32, i32, i32) {
    %c0_i32 = arith.constant 0 : i32
    %c0_i32_0 = arith.constant 0 : i32
    %c0_i32_1 = arith.constant 0 : i32
    %c0_i32_2 = arith.constant 0 : i32
    return %c0_i32, %c0_i32_0, %c0_i32_1 : i32, i32, i32
  }
  func.func @transform_7(%arg0: i32) -> (i32, i32) {
    %c0_i32 = arith.constant 0 : i32
    %c0_i32_0 = arith.constant 0 : i32
    %c0_i32_1 = arith.constant 0 : i32
    return %c0_i32, %c0_i32_0 : i32, i32
  }
  func.func @transform_8(%arg0: i32) -> (i32, i32) {
    %c0_i32 = arith.constant 0 : i32
    %c0_i32_0 = arith.constant 0 : i32
    return %arg0, %c0_i32 : i32, i32
  }
}

</mosaic_0001>

<bundles_post_ra>
// kernel: tpu_custom_call.1
= control target key start
LH: loop header
LB: loop body
LE: loop exit
PB: predicated region body
PF: predicated region fallthrough
CT: control target
= control target key end

     0   :  { %13 = vsyncpa [#allocation3], 0  ;;  %s1649_s0 = inlined_call_operand.hbm [shape: f32[8,16], index: 0, kind: input, shape index: {}]   ;;  %s1650_s1 = inlined_call_operand.hbm [shape: f32[8,8], index: 1, kind: input, shape index: {}]   ;;  %s1651_s2 = inlined_call_operand.hbm [shape: f32[16,512], index: 2, kind: input, shape index: {}]   ;;  %s1652_s3 = inlined_call_operand.hbm [shape: f32[8,512], index: 3, kind: input, shape index: {}]   ;;  %s1653_s4 = inlined_call_operand.vmem [shape: f32[256,256], index: 4, kind: input, shape index: {}]   ;;  %s1654_s5 = inlined_call_operand.hbm [shape: f32[256,256], index: 5, kind: input, shape index: {}]   ;;  %s1655_s6 = inlined_call_operand.vmem [shape: f32[2,256,2], index: 6, kind: input, shape index: {}]   ;;  %s1656_s7 = inlined_call_operand.vmem [shape: f32[1,1026], index: 7, kind: input, shape index: {}]   ;;  %s1657_s8 = inlined_call_operand.vmem [shape: f32[8,2], index: 8, kind: output, shape index: {}]  }
   0x1   :  { %14 = vsyncpa [#allocation5], 0 }
   0x2   :  { %15 = vsyncpa [#allocation8], 0  ;;  %s1170_s27 = smov [#allocation4]   ;;  %s1171_s29 = smov [#allocation7]  }
   0x3   :  { %s32_s28 = sshll.u32 %s1170_s27, 4  ;;  %s54_s30 = sshll.u32 %s1171_s29, 4  ;;  %s33_s28 = int_to_ptr.vmem [resolvable:$true] %s32_s28  ;;  %s55_s30 = int_to_ptr.vmem [resolvable:$true] %s54_s30 }
   0x4   :  { %s1072_s9 = scalar_lea.vmem %s33_s28, 128  ;;  %p1077_p1 = scmp.lt.s32.totalorder %s33_s28, %s33_s28 }
   0x5   :  { %p1073_p0 = scmp.ne.s32.totalorder %s33_s28, %s1072_s9  ;;  %p1078_p2 = scmp.lt.s32.totalorder %s1072_s9, %s1072_s9 }
   0x7   :  { %p1079_p3 = por %p1078_p2, %p1077_p1 }
   0x9   :  { %p1080_p4 = pnand %p1079_p3, %p1073_p0 }
   0xb   :  { %1083 = shalt.err (!%p1080_p4)
}
   0xc   :  { %35 = dma.hbm_to_vmem [thread:$0]  %s1650_s1, 128, %s33_s28, [#allocation5]  }
   0xd   :  { %s1092_s12 = scalar_lea.vmem %s55_s30, 512  ;;  %p1097_p6 = scmp.lt.s32.totalorder %s55_s30, %s55_s30 }
   0xe   :  { %p1093_p5 = scmp.ne.s32.totalorder %s55_s30, %s1092_s12  ;;  %p1098_p7 = scmp.lt.s32.totalorder %s1092_s12, %s1092_s12 }
  0x10   :  { %p1099_p8 = por %p1098_p7, %p1097_p6 }
  0x12   :  { %p1100_p9 = pnand %p1099_p8, %p1093_p5 }
  0x14   :  { %1103 = shalt.err (!%p1100_p9)
}
  0x15   :  { %57 = dma.hbm_to_vmem [thread:$0]  %s1652_s3, 512, %s55_s30, [#allocation8]  }
  0x16   :  { %s1172_s15 = smov [#allocation2]   ;;  %s1173_s17 = smov [#allocation6]  }
  0x17   :  { %s22_s16 = sshll.u32 %s1172_s15, 4  ;;  %s41_s18 = sshll.u32 %s1173_s17, 4  ;;  %s23_s16 = int_to_ptr.vmem [resolvable:$true] %s22_s16  ;;  %s42_s18 = int_to_ptr.vmem [resolvable:$true] %s41_s18 }
  0x18   :  { %s1112_s19 = scalar_lea.vmem %s23_s16, 128  ;;  %p1117_p11 = scmp.lt.s32.totalorder %s23_s16, %s23_s16 }
  0x19   :  { %p1113_p10 = scmp.ne.s32.totalorder %s23_s16, %s1112_s19  ;;  %p1118_p12 = scmp.lt.s32.totalorder %s1112_s19, %s1112_s19 }
  0x1b   :  { %p1119_p13 = por %p1118_p12, %p1117_p11 }
  0x1d   :  { %p1120_p0 = pnand %p1119_p13, %p1113_p10 }
  0x1f   :  { %1123 = shalt.err (!%p1120_p0)
}
  0x20   :  { %25 = dma.hbm_to_vmem [thread:$0]  %s1649_s0, 128, %s23_s16, [#allocation3]  }
  0x21   :  { %s1132_s21 = scalar_lea.vmem %s42_s18, 1024  ;;  %p1137_p2 = scmp.lt.s32.totalorder %s42_s18, %s42_s18 }
  0x22   :  { %p1133_p1 = scmp.ne.s32.totalorder %s42_s18, %s1132_s21  ;;  %p1138_p3 = scmp.lt.s32.totalorder %s1132_s21, %s1132_s21 }
  0x24   :  { %p1139_p4 = por %p1138_p3, %p1137_p2 }
  0x26   :  { %p1140_p5 = pnand %p1139_p4, %p1133_p1 }
  0x28   :  { %1143 = shalt.err (!%p1140_p5)
}
  0x29   :  { %s1174_s3 = smov 512   ;;  %s1175_s22 = smov 32  }
  0x2a   :  { %47 = dma.hbm_to_vmem [thread:$0]  %s1651_s2, 1024, %s42_s18, [#allocation5], %s1174_s3, %s1174_s3, %s1175_s22  }
  0x2b   :  { %s1176_s25 = smov [#allocation9]  }
  0x2c   :  { %s65_s26 = sshll.u32 %s1176_s25, 4  ;;  %s66_s26 = int_to_ptr.vmem [resolvable:$true] %s65_s26 }
  0x2d   :  { %s1152_s27 = scalar_lea.vmem %s66_s26, 8192  ;;  %p1157_p7 = scmp.lt.s32.totalorder %s66_s26, %s66_s26 }
  0x2e   :  { %p1153_p6 = scmp.ne.s32.totalorder %s66_s26, %s1152_s27  ;;  %p1158_p8 = scmp.lt.s32.totalorder %s1152_s27, %s1152_s27 }
  0x30   :  { %p1159_p9 = por %p1158_p8, %p1157_p7 }
  0x32   :  { %p1160_p10 = pnand %p1159_p9, %p1153_p6 }
  0x34   :  { %1163 = shalt.err (!%p1160_p10)
}
  0x35   :  { %s1177_s0 = smov 256   ;;  %s1178_s28 = smov 16  }
  0x36   :  { %71 = dma.hbm_to_vmem [thread:$0]  %s1654_s5, 8192, %s66_s26, [#allocation8], %s1177_s0, %s1177_s0, %s1178_s28  }
  0x37   :  { %1164 = dma.done.wait [#allocation3], 128  }
  0x38   :  { %1165 = vsyncadd [#allocation3], 4294967168 }
  0x39   :  { %1166 = dma.done.wait [#allocation5], 1152  }
  0x3a   :  { %1167 = vsyncadd [#allocation5], 4294966144 }
  0x3b   :  { %1168 = dma.done.wait [#allocation8], 8704  }
  0x3c   :  { %1169 = vsyncadd [#allocation8], 4294958592  ;;  %v1179_v0 = vmov 0.0   ;;  %v106_v1 = vld [vmem:[#allocation7 + $0x8] sm:$0xff]  ;;  %v108_v2 = vld [vmem:[#allocation7 + $0x18] sm:$0xff]  ;;  %vm109_vm0 = vcmask 64512  }
  0x3d   :  { %177 = vmatprep.mubr.f32.mxu0 %v1179_v0  ;;  %248 = vmatprep.mubr.f32.mxu1 %v1179_v0  ;;  %v105_v3 = vld [vmem:[#allocation7] sm:$0xff]  ;;  %v107_v4 = vld [vmem:[#allocation7 + $0x10] sm:$0xff]  ;;  %v104_v5 = vld [vmem:[#allocation4] sm:$0xff]  ;;  %vm255_vm1 = vcmask 130048   ;;  %vm938_vm2 = vcmask 15360  }
  0x3e   :  { %143 = vmatprep.subr.mxu0 %v106_v1  ;;  %214 = vmatprep.subr.mxu1 %v108_v2  ;;  %v101_v6 = vld [vmem:[#allocation6 + $0x28] sm:$0xff]  ;;  %v103_v7 = vld [vmem:[#allocation6 + $0x38] sm:$0xff]  ;;  %v100_v8 = vld [vmem:[#allocation6 + $0x20] sm:$0xff] }
  0x3f   :  { %144 = vmatpush1.msra.mxu0 %v105_v3  ;;  %215 = vmatpush1.msra.mxu1 %v107_v4  ;;  %v102_v9 = vld [vmem:[#allocation6 + $0x30] sm:$0xff]  ;;  %v97_v10 = vld [vmem:[#allocation6 + $0x8] sm:$0xff]  ;;  %v99_v11 = vld [vmem:[#allocation6 + $0x18] sm:$0xff] }
  0x40   :  { %947 = vmatmul.mubr.msk.f32.vlgmr.msra.gmra.mxu0 %vm109_vm0, %v104_v5  ;;  %948 = vmatmul.mubr.msk.f32.vlgmr.msra.gmra.mxu1 %vm109_vm0, %v104_v5  ;;  %v96_v12 = vld [vmem:[#allocation6] sm:$0xff]  ;;  %v98_v13 = vld [vmem:[#allocation6 + $0x10] sm:$0xff]  ;;  %v461_v15 = vld [vmem:[%s1653_s4 + $0xf8] sm:$0xff] }
  0x41   :  { %287 = vmatprep.subr.mxu0 %v101_v6  ;;  %358 = vmatprep.subr.mxu1 %v103_v7  ;;  %v95_v14 = vld [vmem:[#allocation2] sm:$0xff]  ;;  %v609_v16 = vld [vmem:[#allocation9 + $0xf8] sm:$0xff]  ;;  %v460_v17 = vld [vmem:[%s1653_s4 + $0xf0] sm:$0xff] }
  0x42   :  { %288 = vmatpush1.msra.mxu0 %v100_v8  ;;  %359 = vmatpush1.msra.mxu1 %v102_v9  ;;  %v608_v18 = vld [vmem:[#allocation9 + $0xf0] sm:$0xff]  ;;  %v459_v19 = vld [vmem:[%s1653_s4 + $0xe8] sm:$0xff]  ;;  %v607_v20 = vld [vmem:[#allocation9 + $0xe8] sm:$0xff] }
  0x43   :  { %289 = vmatprep.subr.mxu0 %v97_v10  ;;  %360 = vmatprep.subr.mxu1 %v99_v11  ;;  %v458_v21 = vld [vmem:[%s1653_s4 + $0xe0] sm:$0xff]  ;;  %v606_v22 = vld [vmem:[#allocation9 + $0xe0] sm:$0xff]  ;;  %v457_v23 = vld [vmem:[%s1653_s4 + $0xd8] sm:$0xff] }
  0x44   :  { %290 = vmatpush1.msra.mxu0 %v96_v12  ;;  %323 = vmatprep.mubr.f32.mxu0 %v1179_v0  ;;  %v605_v24 = vld [vmem:[#allocation9 + $0xd8] sm:$0xff]  ;;  %v456_v25 = vld [vmem:[%s1653_s4 + $0xd0] sm:$0xff]  ;;  %v604_v26 = vld [vmem:[#allocation9 + $0xd0] sm:$0xff] }
  0x45   :  { %361 = vmatpush1.msra.mxu1 %v98_v13  ;;  %394 = vmatprep.mubr.f32.mxu1 %v1179_v0  ;;  %v455_v27 = vld [vmem:[%s1653_s4 + $0xc8] sm:$0xff]  ;;  %v603_v28 = vld [vmem:[#allocation9 + $0xc8] sm:$0xff]  ;;  %v454_v29 = vld [vmem:[%s1653_s4 + $0xc0] sm:$0xff] }
  0x46   :  { %949 = vmatmul.mubr.msk.f32.vlgmr.msra.gmra.mxu0 %vm255_vm1, %v95_v14  ;;  %950 = vmatmul.mubr.msk.f32.vlgmr.msra.gmra.mxu1 %vm255_vm1, %v95_v14  ;;  %v602_v30 = vld [vmem:[#allocation9 + $0xc0] sm:$0xff]  ;;  %v453_v31 = vld [vmem:[%s1653_s4 + $0xb8] sm:$0xff]  ;;  %v601_v32 = vld [vmem:[#allocation9 + $0xb8] sm:$0xff] }
  0x47   :  { %505 = vmatprep.subr.mxu0 %v461_v15  ;;  %653 = vmatprep.subr.mxu1 %v609_v16  ;;  %v452_v33 = vld [vmem:[%s1653_s4 + $0xb0] sm:$0xff]  ;;  %v600_v34 = vld [vmem:[#allocation9 + $0xb0] sm:$0xff]  ;;  %v451_v35 = vld [vmem:[%s1653_s4 + $0xa8] sm:$0xff] }
  0x48   :  { %506 = vmatpush1.msra.mxu0 %v460_v17  ;;  %654 = vmatpush1.msra.mxu1 %v608_v18  ;;  %v599_v36 = vld [vmem:[#allocation9 + $0xa8] sm:$0xff]  ;;  %v450_v37 = vld [vmem:[%s1653_s4 + $0xa0] sm:$0xff]  ;;  %v598_v38 = vld [vmem:[#allocation9 + $0xa0] sm:$0xff] }
  0x49   :  { %507 = vmatprep.subr.mxu0 %v459_v19  ;;  %655 = vmatprep.subr.mxu1 %v607_v20  ;;  %v449_v39 = vld [vmem:[%s1653_s4 + $0x98] sm:$0xff]  ;;  %v597_v40 = vld [vmem:[#allocation9 + $0x98] sm:$0xff]  ;;  %v448_v41 = vld [vmem:[%s1653_s4 + $0x90] sm:$0xff] }
  0x4a   :  { %508 = vmatpush1.msra.mxu0 %v458_v21  ;;  %656 = vmatpush1.msra.mxu1 %v606_v22  ;;  %v596_v42 = vld [vmem:[#allocation9 + $0x90] sm:$0xff]  ;;  %v447_v43 = vld [vmem:[%s1653_s4 + $0x88] sm:$0xff]  ;;  %v595_v44 = vld [vmem:[#allocation9 + $0x88] sm:$0xff] }
  0x4b   :  { %509 = vmatprep.subr.mxu0 %v457_v23  ;;  %657 = vmatprep.subr.mxu1 %v605_v24  ;;  %v446_v45 = vld [vmem:[%s1653_s4 + $0x80] sm:$0xff]  ;;  %v594_v46 = vld [vmem:[#allocation9 + $0x80] sm:$0xff]  ;;  %v445_v47 = vld [vmem:[%s1653_s4 + $0x78] sm:$0xff] }
  0x4c   :  { %510 = vmatpush1.msra.mxu0 %v456_v25  ;;  %658 = vmatpush1.msra.mxu1 %v604_v26  ;;  %v593_v48 = vld [vmem:[#allocation9 + $0x78] sm:$0xff]  ;;  %v444_v49 = vld [vmem:[%s1653_s4 + $0x70] sm:$0xff]  ;;  %v592_v50 = vld [vmem:[#allocation9 + $0x70] sm:$0xff] }
  0x4d   :  { %511 = vmatprep.subr.mxu0 %v455_v27  ;;  %659 = vmatprep.subr.mxu1 %v603_v28  ;;  %v443_v51 = vld [vmem:[%s1653_s4 + $0x68] sm:$0xff]  ;;  %v591_v52 = vld [vmem:[#allocation9 + $0x68] sm:$0xff]  ;;  %v442_v53 = vld [vmem:[%s1653_s4 + $0x60] sm:$0xff] }
  0x4e   :  { %512 = vmatpush1.msra.mxu0 %v454_v29  ;;  %660 = vmatpush1.msra.mxu1 %v602_v30  ;;  %v590_v54 = vld [vmem:[#allocation9 + $0x60] sm:$0xff]  ;;  %v441_v55 = vld [vmem:[%s1653_s4 + $0x58] sm:$0xff]  ;;  %v589_v56 = vld [vmem:[#allocation9 + $0x58] sm:$0xff] }
  0x4f   :  { %513 = vmatprep.subr.mxu0 %v453_v31  ;;  %661 = vmatprep.subr.mxu1 %v601_v32  ;;  %v440_v57 = vld [vmem:[%s1653_s4 + $0x50] sm:$0xff]  ;;  %v588_v58 = vld [vmem:[#allocation9 + $0x50] sm:$0xff]  ;;  %v439_v59 = vld [vmem:[%s1653_s4 + $0x48] sm:$0xff] }
  0x50   :  { %514 = vmatpush1.msra.mxu0 %v452_v33  ;;  %662 = vmatpush1.msra.mxu1 %v600_v34  ;;  %v587_v60 = vld [vmem:[#allocation9 + $0x48] sm:$0xff]  ;;  %v438_v61 = vld [vmem:[%s1653_s4 + $0x40] sm:$0xff]  ;;  %v586_v62 = vld [vmem:[#allocation9 + $0x40] sm:$0xff] }
  0x51   :  { %515 = vmatprep.subr.mxu0 %v451_v35  ;;  %663 = vmatprep.subr.mxu1 %v599_v36  ;;  %v437_v63 = vld [vmem:[%s1653_s4 + $0x38] sm:$0xff]  ;;  %v585_v0 = vld [vmem:[#allocation9 + $0x38] sm:$0xff]  ;;  %v436_v1 = vld [vmem:[%s1653_s4 + $0x30] sm:$0xff] }
  0x52   :  { %516 = vmatpush1.msra.mxu0 %v450_v37  ;;  %664 = vmatpush1.msra.mxu1 %v598_v38  ;;  %v584_v2 = vld [vmem:[#allocation9 + $0x30] sm:$0xff]  ;;  %v435_v3 = vld [vmem:[%s1653_s4 + $0x28] sm:$0xff]  ;;  %v583_v4 = vld [vmem:[#allocation9 + $0x28] sm:$0xff] }
  0x53   :  { %517 = vmatprep.subr.mxu0 %v449_v39  ;;  %665 = vmatprep.subr.mxu1 %v597_v40  ;;  %v434_v5 = vld [vmem:[%s1653_s4 + $0x20] sm:$0xff]  ;;  %v582_v6 = vld [vmem:[#allocation9 + $0x20] sm:$0xff]  ;;  %v433_v7 = vld [vmem:[%s1653_s4 + $0x18] sm:$0xff] }
  0x54   :  { %518 = vmatpush1.msra.mxu0 %v448_v41  ;;  %666 = vmatpush1.msra.mxu1 %v596_v42  ;;  %v581_v8 = vld [vmem:[#allocation9 + $0x18] sm:$0xff]  ;;  %v432_v9 = vld [vmem:[%s1653_s4 + $0x10] sm:$0xff]  ;;  %v580_v10 = vld [vmem:[#allocation9 + $0x10] sm:$0xff] }
  0x55   :  { %519 = vmatprep.subr.mxu0 %v447_v43  ;;  %667 = vmatprep.subr.mxu1 %v595_v44  ;;  %v431_v11 = vld [vmem:[%s1653_s4 + $0x8] sm:$0xff]  ;;  %v579_v12 = vld [vmem:[#allocation9 + $0x8] sm:$0xff]  ;;  %v430_v13 = vld [vmem:[%s1653_s4] sm:$0xff] }
  0x56   :  { %520 = vmatpush1.msra.mxu0 %v446_v45  ;;  %668 = vmatpush1.msra.mxu1 %v594_v46  ;;  %v578_v14 = vld [vmem:[#allocation9] sm:$0xff]  ;;  %v493_v15 = vld [vmem:[%s1653_s4 + $0x1f8] sm:$0xff]  ;;  %v641_v16 = vld [vmem:[#allocation9 + $0x1f8] sm:$0xff] }
  0x57   :  { %521 = vmatprep.subr.mxu0 %v445_v47  ;;  %669 = vmatprep.subr.mxu1 %v593_v48  ;;  %v492_v17 = vld [vmem:[%s1653_s4 + $0x1f0] sm:$0xff]  ;;  %v640_v18 = vld [vmem:[#allocation9 + $0x1f0] sm:$0xff]  ;;  %v491_v19 = vld [vmem:[%s1653_s4 + $0x1e8] sm:$0xff] }
  0x58   :  { %522 = vmatpush1.msra.mxu0 %v444_v49  ;;  %670 = vmatpush1.msra.mxu1 %v592_v50  ;;  %v639_v20 = vld [vmem:[#allocation9 + $0x1e8] sm:$0xff]  ;;  %v490_v21 = vld [vmem:[%s1653_s4 + $0x1e0] sm:$0xff]  ;;  %v638_v22 = vld [vmem:[#allocation9 + $0x1e0] sm:$0xff] }
  0x59   :  { %523 = vmatprep.subr.mxu0 %v443_v51  ;;  %671 = vmatprep.subr.mxu1 %v591_v52  ;;  %v489_v23 = vld [vmem:[%s1653_s4 + $0x1d8] sm:$0xff]  ;;  %v637_v24 = vld [vmem:[#allocation9 + $0x1d8] sm:$0xff]  ;;  %v488_v25 = vld [vmem:[%s1653_s4 + $0x1d0] sm:$0xff] }
  0x5a   :  { %524 = vmatpush1.msra.mxu0 %v442_v53  ;;  %672 = vmatpush1.msra.mxu1 %v590_v54  ;;  %v636_v26 = vld [vmem:[#allocation9 + $0x1d0] sm:$0xff]  ;;  %v487_v27 = vld [vmem:[%s1653_s4 + $0x1c8] sm:$0xff]  ;;  %v635_v28 = vld [vmem:[#allocation9 + $0x1c8] sm:$0xff] }
  0x5b   :  { %525 = vmatprep.subr.mxu0 %v441_v55  ;;  %673 = vmatprep.subr.mxu1 %v589_v56  ;;  %v486_v29 = vld [vmem:[%s1653_s4 + $0x1c0] sm:$0xff]  ;;  %v634_v30 = vld [vmem:[#allocation9 + $0x1c0] sm:$0xff]  ;;  %v485_v31 = vld [vmem:[%s1653_s4 + $0x1b8] sm:$0xff] }
  0x5c   :  { %526 = vmatpush1.msra.mxu0 %v440_v57  ;;  %674 = vmatpush1.msra.mxu1 %v588_v58  ;;  %v633_v32 = vld [vmem:[#allocation9 + $0x1b8] sm:$0xff]  ;;  %v484_v33 = vld [vmem:[%s1653_s4 + $0x1b0] sm:$0xff]  ;;  %v632_v34 = vld [vmem:[#allocation9 + $0x1b0] sm:$0xff] }
  0x5d   :  { %527 = vmatprep.subr.mxu0 %v439_v59  ;;  %675 = vmatprep.subr.mxu1 %v587_v60  ;;  %v483_v35 = vld [vmem:[%s1653_s4 + $0x1a8] sm:$0xff]  ;;  %v631_v36 = vld [vmem:[#allocation9 + $0x1a8] sm:$0xff]  ;;  %v482_v37 = vld [vmem:[%s1653_s4 + $0x1a0] sm:$0xff] }
  0x5e   :  { %528 = vmatpush1.msra.mxu0 %v438_v61  ;;  %676 = vmatpush1.msra.mxu1 %v586_v62  ;;  %v630_v38 = vld [vmem:[#allocation9 + $0x1a0] sm:$0xff]  ;;  %v481_v39 = vld [vmem:[%s1653_s4 + $0x198] sm:$0xff]  ;;  %v629_v40 = vld [vmem:[#allocation9 + $0x198] sm:$0xff] }
  0x5f   :  { %529 = vmatprep.subr.mxu0 %v437_v63  ;;  %677 = vmatprep.subr.mxu1 %v585_v0  ;;  %v480_v41 = vld [vmem:[%s1653_s4 + $0x190] sm:$0xff]  ;;  %v628_v42 = vld [vmem:[#allocation9 + $0x190] sm:$0xff]  ;;  %v479_v43 = vld [vmem:[%s1653_s4 + $0x188] sm:$0xff] }
  0x60   :  { %530 = vmatpush1.msra.mxu0 %v436_v1  ;;  %678 = vmatpush1.msra.mxu1 %v584_v2  ;;  %v627_v44 = vld [vmem:[#allocation9 + $0x188] sm:$0xff]  ;;  %v478_v45 = vld [vmem:[%s1653_s4 + $0x180] sm:$0xff]  ;;  %v626_v46 = vld [vmem:[#allocation9 + $0x180] sm:$0xff] }
  0x61   :  { %531 = vmatprep.subr.mxu0 %v435_v3  ;;  %679 = vmatprep.subr.mxu1 %v583_v4  ;;  %v477_v47 = vld [vmem:[%s1653_s4 + $0x178] sm:$0xff]  ;;  %v625_v48 = vld [vmem:[#allocation9 + $0x178] sm:$0xff]  ;;  %v476_v49 = vld [vmem:[%s1653_s4 + $0x170] sm:$0xff] }
  0x62   :  { %532 = vmatpush1.msra.mxu0 %v434_v5  ;;  %680 = vmatpush1.msra.mxu1 %v582_v6  ;;  %v624_v50 = vld [vmem:[#allocation9 + $0x170] sm:$0xff]  ;;  %v475_v51 = vld [vmem:[%s1653_s4 + $0x168] sm:$0xff]  ;;  %v623_v52 = vld [vmem:[#allocation9 + $0x168] sm:$0xff] }
  0x63   :  { %533 = vmatprep.subr.mxu0 %v433_v7  ;;  %681 = vmatprep.subr.mxu1 %v581_v8  ;;  %v474_v53 = vld [vmem:[%s1653_s4 + $0x160] sm:$0xff]  ;;  %v622_v54 = vld [vmem:[#allocation9 + $0x160] sm:$0xff]  ;;  %v473_v55 = vld [vmem:[%s1653_s4 + $0x158] sm:$0xff] }
  0x64   :  { %534 = vmatpush1.msra.mxu0 %v432_v9  ;;  %682 = vmatpush1.msra.mxu1 %v580_v10  ;;  %v621_v56 = vld [vmem:[#allocation9 + $0x158] sm:$0xff]  ;;  %v472_v57 = vld [vmem:[%s1653_s4 + $0x150] sm:$0xff]  ;;  %v620_v58 = vld [vmem:[#allocation9 + $0x150] sm:$0xff] }
  0x65   :  { %535 = vmatprep.subr.mxu0 %v431_v11  ;;  %683 = vmatprep.subr.mxu1 %v579_v12  ;;  %v471_v59 = vld [vmem:[%s1653_s4 + $0x148] sm:$0xff]  ;;  %v619_v60 = vld [vmem:[#allocation9 + $0x148] sm:$0xff]  ;;  %v470_v61 = vld [vmem:[%s1653_s4 + $0x140] sm:$0xff] }
  0x66   :  { %536 = vmatpush1.msra.mxu0 %v430_v13  ;;  %684 = vmatpush1.msra.mxu1 %v578_v14  ;;  %v618_v62 = vld [vmem:[#allocation9 + $0x140] sm:$0xff]  ;;  %v469_v63 = vld [vmem:[%s1653_s4 + $0x138] sm:$0xff]  ;;  %v617_v0 = vld [vmem:[#allocation9 + $0x138] sm:$0xff] }
  0x67   :  { %537 = vmatprep.subr.mxu0 %v493_v15  ;;  %685 = vmatprep.subr.mxu1 %v641_v16  ;;  %v468_v1 = vld [vmem:[%s1653_s4 + $0x130] sm:$0xff]  ;;  %v616_v2 = vld [vmem:[#allocation9 + $0x130] sm:$0xff]  ;;  %v467_v3 = vld [vmem:[%s1653_s4 + $0x128] sm:$0xff] }
  0x68   :  { %538 = vmatpush2.msra.mxu0 %v492_v17  ;;  %686 = vmatpush2.msra.mxu1 %v640_v18  ;;  %v615_v4 = vld [vmem:[#allocation9 + $0x128] sm:$0xff]  ;;  %v466_v5 = vld [vmem:[%s1653_s4 + $0x120] sm:$0xff]  ;;  %v614_v6 = vld [vmem:[#allocation9 + $0x120] sm:$0xff]  ;;  %v402_v17 = vlaneseq }
  0x69   :  { %539 = vmatprep.subr.mxu0 %v491_v19  ;;  %687 = vmatprep.subr.mxu1 %v639_v20  ;;  %v465_v7 = vld [vmem:[%s1653_s4 + $0x118] sm:$0xff]  ;;  %v613_v8 = vld [vmem:[#allocation9 + $0x118] sm:$0xff]  ;;  %v464_v9 = vld [vmem:[%s1653_s4 + $0x110] sm:$0xff] }
  0x6a   :  { %540 = vmatpush2.msra.mxu0 %v490_v21  ;;  %688 = vmatpush2.msra.mxu1 %v638_v22  ;;  %v612_v10 = vld [vmem:[#allocation9 + $0x110] sm:$0xff]  ;;  %v463_v11 = vld [vmem:[%s1653_s4 + $0x108] sm:$0xff]  ;;  %v611_v12 = vld [vmem:[#allocation9 + $0x108] sm:$0xff]  ;;  %v403_v18 = vshrl.u32 %v402_v17, 7 }
  0x6b   :  { %541 = vmatprep.subr.mxu0 %v489_v23  ;;  %689 = vmatprep.subr.mxu1 %v637_v24  ;;  %v462_v13 = vld [vmem:[%s1653_s4 + $0x100] sm:$0xff]  ;;  %v610_v14 = vld [vmem:[#allocation9 + $0x100] sm:$0xff]  ;;  %v982_v15 = vld [vmem:[%s1655_s6 + $0x1f8] sm:$0xff] }
  0x6c   :  { %542 = vmatpush2.msra.mxu0 %v488_v25  ;;  %690 = vmatpush2.msra.mxu1 %v636_v26  ;;  %v757_v16 = vld [vmem:[%s1655_s6 + $0xf8] sm:$0xff]  ;;  %v1438_v23 = vsub.s32 0, %v403_v18  ;;  %v412_v24 = vsub.s32 2, %v403_v18  ;;  %v91_v25 = vld [vmem:[%s1656_s7] sm:$0xf]  ;;  %v1443_v26 = vsub.s32 1, %v403_v18 }
  0x6d   :  { %543 = vmatprep.subr.mxu0 %v487_v27  ;;  %691 = vmatprep.subr.mxu1 %v635_v28  ;;  %v416_v27 = vsub.s32 3, %v403_v18  ;;  %v733_v17 = vld [vmem:[%s1655_s6 + $0x38] sm:$0xff]  ;;  %v973_v18 = vld [vmem:[%s1655_s6 + $0x1b0] sm:$0xff] }
  0x6e   :  { %544 = vmatpush2.msra.mxu0 %v486_v29  ;;  %692 = vmatpush2.msra.mxu1 %v634_v30  ;;  %v405_v29 = vrot.slane %v91_v25, %v1438_v23 }
  0x6f   :  { %545 = vmatprep.subr.mxu0 %v485_v31  ;;  %693 = vmatprep.subr.mxu1 %v633_v32  ;;  %v413_v31 = vrot.slane %v91_v25, %v412_v24  ;;  %v747_v24 = vld [vmem:[%s1655_s6 + $0xa8] sm:$0xff] }
  0x70   :  { %546 = vmatpush2.msra.mxu0 %v484_v33  ;;  %694 = vmatpush2.msra.mxu1 %v632_v34  ;;  %v409_v34 = vrot.slane %v91_v25, %v1443_v26 }
  0x71   :  { %547 = vmatprep.subr.mxu0 %v483_v35  ;;  %695 = vmatprep.subr.mxu1 %v631_v36  ;;  %v417_v35 = vrot.slane %v91_v25, %v416_v27  ;;  %v956_v25 = vld [vmem:[%s1655_s6 + $0x128] sm:$0xff] }
  0x72   :  { %548 = vmatpush2.msra.mxu0 %v482_v37  ;;  %696 = vmatpush2.msra.mxu1 %v630_v38  ;;  %v731_v27 = vld [vmem:[%s1655_s6 + $0x28] sm:$0xff] }
  0x73   :  { %549 = vmatprep.subr.mxu0 %v481_v39  ;;  %697 = vmatprep.subr.mxu1 %v629_v40 }
  0x74   :  { %550 = vmatpush2.msra.mxu0 %v480_v41  ;;  %698 = vmatpush2.msra.mxu1 %v628_v42 }
  0x75   :  { %551 = vmatprep.subr.mxu0 %v479_v43  ;;  %699 = vmatprep.subr.mxu1 %v627_v44 }
  0x76   :  { %552 = vmatpush2.msra.mxu0 %v478_v45  ;;  %700 = vmatpush2.msra.mxu1 %v626_v46 }
  0x77   :  { %553 = vmatprep.subr.mxu0 %v477_v47  ;;  %701 = vmatprep.subr.mxu1 %v625_v48  ;;  %v966_v48 = vld [vmem:[%s1655_s6 + $0x178] sm:$0xff] }
  0x78   :  { %554 = vmatpush2.msra.mxu0 %v476_v49  ;;  %702 = vmatpush2.msra.mxu1 %v624_v50  ;;  %v741_v49 = vld [vmem:[%s1655_s6 + $0x78] sm:$0xff]  ;;  %v981_v50 = vld [vmem:[%s1655_s6 + $0x1f0] sm:$0xff] }
  0x79   :  { %555 = vmatprep.subr.mxu0 %v475_v51  ;;  %703 = vmatprep.subr.mxu1 %v623_v52  ;;  %v756_v51 = vld [vmem:[%s1655_s6 + $0xf0] sm:$0xff] }
  0x7a   :  { %556 = vmatpush2.msra.mxu0 %v474_v53  ;;  %704 = vmatpush2.msra.mxu1 %v622_v54  ;;  %v965_v52 = vld [vmem:[%s1655_s6 + $0x170] sm:$0xff]  ;;  %v980_v54 = vld [vmem:[%s1655_s6 + $0x1e8] sm:$0xff] }
  0x7b   :  { %557 = vmatprep.subr.mxu0 %v473_v55  ;;  %705 = vmatprep.subr.mxu1 %v621_v56  ;;  %v740_v53 = vld [vmem:[%s1655_s6 + $0x70] sm:$0xff]  ;;  %v755_v55 = vld [vmem:[%s1655_s6 + $0xe8] sm:$0xff] }
  0x7c   :  { %558 = vmatpush2.msra.mxu0 %v472_v57  ;;  %706 = vmatpush2.msra.mxu1 %v620_v58  ;;  %v964_v56 = vld [vmem:[%s1655_s6 + $0x168] sm:$0xff]  ;;  %v979_v58 = vld [vmem:[%s1655_s6 + $0x1e0] sm:$0xff] }
  0x7d   :  { %559 = vmatprep.subr.mxu0 %v471_v59  ;;  %707 = vmatprep.subr.mxu1 %v619_v60  ;;  %v739_v57 = vld [vmem:[%s1655_s6 + $0x68] sm:$0xff]  ;;  %v754_v59 = vld [vmem:[%s1655_s6 + $0xe0] sm:$0xff] }
  0x7e   :  { %560 = vmatpush2.msra.mxu0 %v470_v61  ;;  %708 = vmatpush2.msra.mxu1 %v618_v62  ;;  %v963_v60 = vld [vmem:[%s1655_s6 + $0x160] sm:$0xff]  ;;  %v978_v62 = vld [vmem:[%s1655_s6 + $0x1d8] sm:$0xff] }
  0x7f   :  { %561 = vmatprep.subr.mxu0 %v469_v63  ;;  %709 = vmatprep.subr.mxu1 %v617_v0  ;;  %v738_v61 = vld [vmem:[%s1655_s6 + $0x60] sm:$0xff]  ;;  %v753_v63 = vld [vmem:[%s1655_s6 + $0xd8] sm:$0xff] }
  0x80   :  { %562 = vmatpush2.msra.mxu0 %v468_v1  ;;  %710 = vmatpush2.msra.mxu1 %v616_v2  ;;  %v962_v0 = vld [vmem:[%s1655_s6 + $0x158] sm:$0xff]  ;;  %v977_v2 = vld [vmem:[%s1655_s6 + $0x1d0] sm:$0xff] }
  0x81   :  { %563 = vmatprep.subr.mxu0 %v467_v3  ;;  %711 = vmatprep.subr.mxu1 %v615_v4  ;;  %v737_v1 = vld [vmem:[%s1655_s6 + $0x58] sm:$0xff]  ;;  %v752_v3 = vld [vmem:[%s1655_s6 + $0xd0] sm:$0xff] }
  0x82   :  { %564 = vmatpush2.msra.mxu0 %v466_v5  ;;  %712 = vmatpush2.msra.mxu1 %v614_v6  ;;  %v961_v4 = vld [vmem:[%s1655_s6 + $0x150] sm:$0xff]  ;;  %v976_v6 = vld [vmem:[%s1655_s6 + $0x1c8] sm:$0xff] }
  0x83   :  { %565 = vmatprep.subr.mxu0 %v465_v7  ;;  %713 = vmatprep.subr.mxu1 %v613_v8  ;;  %v736_v5 = vld [vmem:[%s1655_s6 + $0x50] sm:$0xff]  ;;  %v751_v7 = vld [vmem:[%s1655_s6 + $0xc8] sm:$0xff] }
  0x84   :  { %566 = vmatpush2.msra.mxu0 %v464_v9  ;;  %714 = vmatpush2.msra.mxu1 %v612_v10  ;;  %v960_v8 = vld [vmem:[%s1655_s6 + $0x148] sm:$0xff]  ;;  %v975_v10 = vld [vmem:[%s1655_s6 + $0x1c0] sm:$0xff] }
  0x85   :  { %567 = vmatprep.subr.mxu0 %v463_v11  ;;  %715 = vmatprep.subr.mxu1 %v611_v12  ;;  %v735_v9 = vld [vmem:[%s1655_s6 + $0x48] sm:$0xff]  ;;  %v750_v11 = vld [vmem:[%s1655_s6 + $0xc0] sm:$0xff] }
  0x86   :  { %568 = vmatpush2.msra.mxu0 %v462_v13  ;;  %716 = vmatpush2.msra.mxu1 %v610_v14  ;;  %v959_v12 = vld [vmem:[%s1655_s6 + $0x140] sm:$0xff]  ;;  %v974_v14 = vld [vmem:[%s1655_s6 + $0x1b8] sm:$0xff] }
  0x87   :  { %984 = vmatprep.subr.mxu0 %v982_v15  ;;  %1019 = vmatprep.subr.mxu1 %v757_v16  ;;  %v734_v13 = vld [vmem:[%s1655_s6 + $0x40] sm:$0xff]  ;;  %v749_v15 = vld [vmem:[%s1655_s6 + $0xb8] sm:$0xff] }
  0x88   :  { %v958_v16 = vld [vmem:[%s1655_s6 + $0x138] sm:$0xff] }
 0x100   :  { %v179_v19 = vpop.f32.mrf.mxu0  ;;  %v250_v20 = vpop.f32.mrf.mxu1 }
 0x102   :  { %v181_v21 = vpop.f32.mrf.mxu0  ;;  %v252_v22 = vpop.f32.mrf.mxu1 }
 0x106   :  { %v325_v28 = vpop.f32.mrf.mxu0  ;;  %v396_v30 = vpop.f32.mrf.mxu1 }
 0x107   :  { %v326_v32 = vadd.f32 %v325_v28, %v179_v19  ;;  %v397_v33 = vadd.f32 %v396_v30, %v250_v20  ;;  %v748_v19 = vld [vmem:[%s1655_s6 + $0xb0] sm:$0xff]  ;;  %v971_v28 = vld [vmem:[%s1655_s6 + $0x1a0] sm:$0xff] }
 0x108   :  { %v327_v36 = vpop.f32.mrf.mxu0  ;;  %v398_v37 = vpop.f32.mrf.mxu1  ;;  %v957_v20 = vld [vmem:[%s1655_s6 + $0x130] sm:$0xff]  ;;  %v955_v30 = vld [vmem:[%s1655_s6 + $0x120] sm:$0xff] }
 0x109   :  { %v328_v38 = vadd.f32 %v327_v36, %v181_v21  ;;  %v399_v39 = vadd.f32 %v398_v37, %v252_v22  ;;  %v422_v40 = vadd.f32 %v405_v29, %v326_v32  ;;  %v424_v41 = vadd.f32 %v413_v31, %v397_v33  ;;  %v732_v21 = vld [vmem:[%s1655_s6 + $0x30] sm:$0xff]  ;;  %v972_v22 = vld [vmem:[%s1655_s6 + $0x1a8] sm:$0xff]  ;;  %v746_v29 = vld [vmem:[%s1655_s6 + $0xa0] sm:$0xff] }
 0x10a   :  { %v730_v31 = vld [vmem:[%s1655_s6 + $0x20] sm:$0xff]  ;;  %v970_v32 = vld [vmem:[%s1655_s6 + $0x198] sm:$0xff]  ;;  %v969_v36 = vld [vmem:[%s1655_s6 + $0x190] sm:$0xff] }
 0x10b   :  { %v423_v42 = vadd.f32 %v409_v34, %v328_v38  ;;  %v425_v43 = vadd.f32 %v417_v35, %v399_v39  ;;  %v426_v46 = vmax.f32 %v422_v40, 0.0  ;;  %v428_v47 = vmax.f32 %v424_v41, 0.0  ;;  %v745_v33 = vld [vmem:[%s1655_s6 + $0x98] sm:$0xff]  ;;  %v744_v37 = vld [vmem:[%s1655_s6 + $0x90] sm:$0xff]  ;;  %v968_v40 = vld [vmem:[%s1655_s6 + $0x188] sm:$0xff] }
 0x10c   :  { %v954_v34 = vld [vmem:[%s1655_s6 + $0x118] sm:$0xff]  ;;  %v953_v38 = vld [vmem:[%s1655_s6 + $0x110] sm:$0xff]  ;;  %v743_v41 = vld [vmem:[%s1655_s6 + $0x88] sm:$0xff] }
 0x10d   :  { %v427_v44 = vmax.f32 %v423_v42, 0.0  ;;  %v429_v45 = vmax.f32 %v425_v43, 0.0  ;;  %v729_v35 = vld [vmem:[%s1655_s6 + $0x18] sm:$0xff]  ;;  %v728_v39 = vld [vmem:[%s1655_s6 + $0x10] sm:$0xff]  ;;  %v952_v42 = vld [vmem:[%s1655_s6 + $0x108] sm:$0xff] }
 0x10e   :  { %v727_v43 = vld [vmem:[%s1655_s6 + $0x8] sm:$0xff] }
 0x10f   :  { %569 = vmatprep.mubr.f32.mxu0 %v427_v44  ;;  %717 = vmatprep.mubr.f32.mxu1 %v429_v45  ;;  %v967_v44 = vld [vmem:[%s1655_s6 + $0x180] sm:$0xff] }
 0x110   :  { %570 = vmatmul.mubr.f32.vlgmr.msra.gmra.mxu0 %v426_v46  ;;  %718 = vmatmul.mubr.f32.vlgmr.msra.gmra.mxu1 %v428_v47  ;;  %v742_v45 = vld [vmem:[%s1655_s6 + $0x80] sm:$0xff] }
 0x111   :  { %985 = vmatpush3.msra.mxu0 %v966_v48  ;;  %1020 = vmatpush3.msra.mxu1 %v741_v49  ;;  %v951_v46 = vld [vmem:[%s1655_s6 + $0x100] sm:$0xff] }
 0x112   :  { %986 = vmatprep.subr.mxu0 %v981_v50  ;;  %1021 = vmatprep.subr.mxu1 %v756_v51  ;;  %v726_v47 = vld [vmem:[%s1655_s6] sm:$0xff] }
 0x113   :  { %987 = vmatpush3.msra.mxu0 %v965_v52  ;;  %1022 = vmatpush3.msra.mxu1 %v740_v53  ;;  %v92_v48 = vld [vmem:[%s1656_s7 + $0x4] sm:$0x3]  ;;  %v93_v49 = vld [vmem:[%s1656_s7 + $0x6] sm:$0x3] }
 0x114   :  { %988 = vmatprep.subr.mxu0 %v980_v54  ;;  %1023 = vmatprep.subr.mxu1 %v755_v55  ;;  %v498_v50 = vrot.slane %v92_v48, %v1438_v23  ;;  %v646_v51 = vrot.slane %v93_v49, %v1438_v23  ;;  %v502_v52 = vrot.slane %v92_v48, %v1443_v26 }
 0x115   :  { %989 = vmatpush3.msra.mxu0 %v964_v56  ;;  %1024 = vmatpush3.msra.mxu1 %v739_v57  ;;  %v650_v53 = vrot.slane %v93_v49, %v1443_v26 }
 0x116   :  { %990 = vmatprep.subr.mxu0 %v979_v58  ;;  %1025 = vmatprep.subr.mxu1 %v754_v59 }
 0x117   :  { %991 = vmatpush3.msra.mxu0 %v963_v60  ;;  %1026 = vmatpush3.msra.mxu1 %v738_v61 }
 0x118   :  { %992 = vmatprep.subr.mxu0 %v978_v62  ;;  %1027 = vmatprep.subr.mxu1 %v753_v63 }
 0x119   :  { %993 = vmatpush3.msra.mxu0 %v962_v0  ;;  %1028 = vmatpush3.msra.mxu1 %v737_v1 }
 0x11a   :  { %994 = vmatprep.subr.mxu0 %v977_v2  ;;  %1029 = vmatprep.subr.mxu1 %v752_v3 }
 0x11b   :  { %995 = vmatpush3.msra.mxu0 %v961_v4  ;;  %1030 = vmatpush3.msra.mxu1 %v736_v5 }
 0x11c   :  { %996 = vmatprep.subr.mxu0 %v976_v6  ;;  %1031 = vmatprep.subr.mxu1 %v751_v7  ;;  %v983_v6 = vld [vmem:[%s1656_s7 + $0x8] ss:$0 sm:$0xff] }
 0x11d   :  { %997 = vmatpush3.msra.mxu0 %v960_v8  ;;  %1032 = vmatpush3.msra.mxu1 %v735_v9 }
 0x11e   :  { %998 = vmatprep.subr.mxu0 %v975_v10  ;;  %1033 = vmatprep.subr.mxu1 %v750_v11 }
 0x11f   :  { %999 = vmatpush3.msra.mxu0 %v959_v12  ;;  %1034 = vmatpush3.msra.mxu1 %v734_v13 }
 0x120   :  { %1000 = vmatprep.subr.mxu0 %v974_v14  ;;  %1035 = vmatprep.subr.mxu1 %v749_v15 }
 0x121   :  { %1001 = vmatpush3.msra.mxu0 %v958_v16  ;;  %1036 = vmatpush3.msra.mxu1 %v733_v17 }
 0x122   :  { %1002 = vmatprep.subr.mxu0 %v973_v18  ;;  %1037 = vmatprep.subr.mxu1 %v748_v19 }
 0x123   :  { %1003 = vmatpush3.msra.mxu0 %v957_v20  ;;  %1038 = vmatpush3.msra.mxu1 %v732_v21 }
 0x124   :  { %1004 = vmatprep.subr.mxu0 %v972_v22  ;;  %1039 = vmatprep.subr.mxu1 %v747_v24 }
 0x125   :  { %1005 = vmatpush3.msra.mxu0 %v956_v25  ;;  %1040 = vmatpush3.msra.mxu1 %v731_v27 }
 0x126   :  { %1006 = vmatprep.subr.mxu0 %v971_v28  ;;  %1041 = vmatprep.subr.mxu1 %v746_v29 }
 0x127   :  { %1007 = vmatpush3.msra.mxu0 %v955_v30  ;;  %1042 = vmatpush3.msra.mxu1 %v730_v31 }
 0x128   :  { %1008 = vmatprep.subr.mxu0 %v970_v32  ;;  %1043 = vmatprep.subr.mxu1 %v745_v33 }
 0x129   :  { %1009 = vmatpush3.msra.mxu0 %v954_v34  ;;  %1044 = vmatpush3.msra.mxu1 %v729_v35 }
 0x12a   :  { %1010 = vmatprep.subr.mxu0 %v969_v36  ;;  %1045 = vmatprep.subr.mxu1 %v744_v37 }
 0x12b   :  { %1011 = vmatpush3.msra.mxu0 %v953_v38  ;;  %1046 = vmatpush3.msra.mxu1 %v728_v39 }
 0x12c   :  { %1012 = vmatprep.subr.mxu0 %v968_v40  ;;  %1047 = vmatprep.subr.mxu1 %v743_v41 }
 0x12d   :  { %1013 = vmatpush3.msra.mxu0 %v952_v42  ;;  %1048 = vmatpush3.msra.mxu1 %v727_v43 }
 0x12e   :  { %1014 = vmatprep.subr.mxu0 %v967_v44  ;;  %1049 = vmatprep.subr.mxu1 %v742_v45 }
 0x12f   :  { %1015 = vmatpush3.msra.mxu0 %v951_v46  ;;  %1050 = vmatpush3.msra.mxu1 %v726_v47 }
 0x1d0   :  { %v571_v54 = vpop.f32.mrf.mxu0  ;;  %v719_v55 = vpop.f32.mrf.mxu1 }
 0x1d1   :  { %v572_v56 = vadd.f32 %v571_v54, %v498_v50  ;;  %v720_v57 = vadd.f32 %v719_v55, %v646_v51 }
 0x1d2   :  { %v573_v58 = vpop.f32.mrf.mxu0  ;;  %v721_v59 = vpop.f32.mrf.mxu1 }
 0x1d3   :  { %v574_v60 = vadd.f32 %v573_v58, %v502_v52  ;;  %v722_v61 = vadd.f32 %v721_v59, %v650_v53  ;;  %v576_v0 = vmax.f32 %v572_v56, 0.0  ;;  %v724_v1 = vmax.f32 %v720_v57, 0.0 }
 0x1d5   :  { %v577_v62 = vmax.f32 %v574_v60, 0.0  ;;  %v725_v63 = vmax.f32 %v722_v61, 0.0 }
 0x1d7   :  { %855 = vmatprep.mubr.f32.mxu0 %v725_v63  ;;  %925 = vmatprep.mubr.f32.mxu1 %v577_v62 }
 0x1d8   :  { %856 = vmatmul.mubr.f32.vlgmr.msra.gmra.mxu0 %v724_v1  ;;  %926 = vmatmul.mubr.f32.vlgmr.msra.gmra.mxu1 %v576_v0 }
 0x298   :  { %v1016_v23 = vpop.f32.mrf.mxu0  ;;  %v1051_v2 = vpop.f32.mrf.mxu1 }
 0x29a   :  { %v1017_v3 = vpop.f32.mrf.mxu0  ;;  %v1052_v26 = vpop.f32.mrf.mxu1 }
 0x29b   :  { %v1018_v4 = vadd.f32 %v1017_v3, %v1016_v23  ;;  %v1053_v5 = vadd.f32 %v1052_v26, %v1051_v2 }
 0x29d   :  { %v928_v7 = vadd.f32 %v1053_v5, %v1018_v4 }
 0x29f   :  { %v937_v8 = vadd.f32 %v983_v6, %v928_v7 }
 0x2a1   :  { %939 = vst.msk [vmem:[%s1657_s8] sm:$0xff] %vm938_vm2, %v937_v8 }
 0x2a2   :  { %944 = vsyncpa [#allocation3], 1 }
 0x2a3   :  { %945 = vsyncpa [#allocation5], 1 }
 0x2a4   :  { %946 = vsyncpa [#allocation8], 1 }

</bundles_post_ra>
